<compile_context>
chip_gen: v7x
topology: tpu7x:2x2x1
jax: 0.10.0
libtpu: 0.0.40
codegen_flags: <defaults>
</compile_context>

<pallas_src>
import functools

import jax
import jax.numpy as jnp
from jax.experimental import pallas as pl
from jax.experimental.pallas import tpu as pltpu


_UNROLL_NBR_MAX = 16           # static-unroll threshold for the neighbor sum
_FALLBACK_VMEM_BYTES = 64 * 1024 * 1024  # v7x physical; conservative for v5e/v6e


# ---------------------------------------------------------------------------
# Kernel
# ---------------------------------------------------------------------------
def _gcn_agg_kernel(self_ref, neigh_ref, w_ref, out_ref):
    # self_ref : (tm, F)      neigh_ref : (tm, N, F)
    # w_ref    : (F, D_pad)   out_ref   : (tm, D_pad)
    n_nbr = neigh_ref.shape[1]

    acc = self_ref[...].astype(jnp.float32)
    if n_nbr <= _UNROLL_NBR_MAX:
        # Static unroll: one (tm, F) slab per neighbor, never materializes a
        # widened f32 copy of the full (tm, N, F) block. Indices are Python
        # constants, so every slice is a static sublane offset.
        for i in range(n_nbr):
            acc = acc + neigh_ref[:, i, :].astype(jnp.float32)
    else:
        # Single sublane (XLU) reduction for large neighbor counts.
        acc = acc + jnp.sum(neigh_ref[...].astype(jnp.float32), axis=1)

    # Mean over the concatenated [self; neighbors] axis (N + 1 entries).
    mean = acc * (1.0 / float(n_nbr + 1))

    out_ref[...] = jnp.dot(
        mean, w_ref[...], preferred_element_type=jnp.float32
    ).astype(out_ref.dtype)


# ---------------------------------------------------------------------------
# Tiling / VMEM sizing helpers
# ---------------------------------------------------------------------------
def _round_up(x, m):
    return ((x + m - 1) // m) * m


def _default_vmem_limit_bytes():
    try:
        info = pltpu.get_tpu_info()
        phys = int(getattr(info, "vmem_capacity_bytes", _FALLBACK_VMEM_BYTES))
    except Exception:
        phys = _FALLBACK_VMEM_BYTES
    # Leave headroom for compiler-internal scratch below physical capacity.
    return int(phys * 0.75)


def _choose_tile_rows(B, N, F, D_pad, itemsize, vmem_limit_bytes):
    """Largest row tile whose (double-buffered) blocks fit the VMEM budget."""
    tile_budget = int(vmem_limit_bytes * 0.5)        # headroom over explicit blocks
    weight_bytes = 2 * F * D_pad * 4                 # (F, D_pad) block, double-buffered
    per_row = (
        2 * itemsize * (N + 1) * F                   # neigh + self blocks (x2 buffers)
        + 2 * itemsize * D_pad                       # output block (x2 buffers)
        + 4 * F                                      # f32 accumulator slab
        + (4 * N * F if N > _UNROLL_NBR_MAX else 0)  # widened sum intermediate
    )
    tm = (tile_budget - weight_bytes) // max(per_row, 1)
    tm = max(8, min(tm, 2048))
    # Keep >= 2 grid steps when B allows so both megacore TensorCores get work.
    if B > 8:
        tm = min(tm, _round_up(pl.cdiv(B, 2), 8))
    tm = min(tm, _round_up(B, 8))
    return max(8, (tm // 8) * 8)


# ---------------------------------------------------------------------------
# pallas_call wrapper on flattened rows
# ---------------------------------------------------------------------------
@functools.partial(jax.jit, static_argnames=("tm", "vmem_limit_bytes"))
def _gcn_agg_flat(self_flat, neigh_flat, w_t, *, tm, vmem_limit_bytes):
    """self_flat: (B, F), neigh_flat: (B, N, F), w_t: (F, D_pad) -> (B, D_pad)."""
    B, F = self_flat.shape
    _, N, _ = neigh_flat.shape
    D_pad = w_t.shape[1]
    grid = (pl.cdiv(B, tm),)

    return pl.pallas_call(
        _gcn_agg_kernel,
        out_shape=jax.ShapeDtypeStruct((B, D_pad), self_flat.dtype),
        grid_spec=pltpu.PrefetchScalarGridSpec(
            num_scalar_prefetch=0,
            grid=grid,
            in_specs=[
                pl.BlockSpec((tm, F), lambda i: (i, 0)),
                pl.BlockSpec((tm, N, F), lambda i: (i, 0, 0)),
                # Grid-invariant weight block: fetched once.
                pl.BlockSpec((F, D_pad), lambda i: (0, 0)),
            ],
            out_specs=pl.BlockSpec((tm, D_pad), lambda i: (i, 0)),
        ),
        compiler_params=pltpu.CompilerParams(
            dimension_semantics=("parallel",),
            vmem_limit_bytes=int(vmem_limit_bytes),
        ),
    )(self_flat, neigh_flat, w_t)


# ---------------------------------------------------------------------------
# Public forward (mirrors GCNAggregator.forward)
# ---------------------------------------------------------------------------
def gcn_aggregator_forward(self_feat, neigh_feat, weight, *, vmem_limit_bytes=None):
    """weight: PyTorch nn.Linear weight layout, shape (output_dim, input_dim)."""
    # --- plain-JAX glue replicating the PyTorch rank/shape normalization ---
    if self_feat.ndim == neigh_feat.ndim:
        self_shape = list(self_feat.shape)
        neigh_feat = neigh_feat.reshape(self_shape[:-1] + [-1, self_shape[-1]])
    assert self_feat.ndim + 1 == neigh_feat.ndim

    F = self_feat.shape[-1]
    N = neigh_feat.shape[-2]
    lead = self_feat.shape[:-1]
    D = weight.shape[0]
    assert weight.shape[1] == F, "weight must be (output_dim, input_dim)"
    assert neigh_feat.shape[-1] == F

    self_flat = self_feat.reshape(-1, F)
    neigh_flat = neigh_feat.reshape(-1, N, F)
    B = self_flat.shape[0]

    # Lane-dense output: pad D up to a multiple of 128 with zero weight columns
    # (one-time trace-time pad of a tiny tensor), slice the result back.
    D_pad = _round_up(D, 128)
    w_t = weight.T
    if D_pad != D:
        w_t = jnp.pad(w_t, ((0, 0), (0, D_pad - D)))

    itemsize = jnp.dtype(self_flat.dtype).itemsize
    if vmem_limit_bytes is None:
        vmem_limit_bytes = _default_vmem_limit_bytes()
    tm = _choose_tile_rows(B, N, F, D_pad, itemsize, vmem_limit_bytes)

    out_flat = _gcn_agg_flat(
        self_flat, neigh_flat, w_t, tm=tm, vmem_limit_bytes=int(vmem_limit_bytes)
    )
    if D_pad != D:
        out_flat = out_flat[:, :D]
    return out_flat.reshape(lead + (D,))


def glorot_uniform_relu(key, out_dim, in_dim, dtype=jnp.float32):
    """xavier_uniform_ with gain = calculate_gain('relu') = sqrt(2)."""
    gain = jnp.sqrt(2.0)
    limit = gain * jnp.sqrt(6.0 / (in_dim + out_dim))
    return jax.random.uniform(
        key, (out_dim, in_dim), dtype=dtype, minval=-limit, maxval=limit
    )


# ---------------------------------------------------------------------------
# Demo / self-check
# ---------------------------------------------------------------------------
if __name__ == "__main__":
    key = jax.random.PRNGKey(0)
    k_w, k_s1, k_n1, k_s2, k_n2, k_s3, k_n3 = jax.random.split(key, 7)

    input_dim, output_dim = 32, 64
    weight = glorot_uniform_relu(k_w, output_dim, input_dim)  # (D, F) like nn.Linear

    def reference(self_feat, neigh_feat):
        if self_feat.ndim == neigh_feat.ndim:
            s = list(self_feat.shape)
            neigh_feat = neigh_feat.reshape(s[:-1] + [-1, s[-1]])
        concat = jnp.concatenate([self_feat[..., None, :], neigh_feat], axis=-2)
        return jnp.mean(concat, axis=-2) @ weight.T

    # case 1: (B, F) self, (B, N, F) neigh.
    s1 = jax.random.normal(k_s1, (16, input_dim), dtype=jnp.float32)
    n1 = jax.random.normal(k_n1, (16, 8, input_dim), dtype=jnp.float32)
    o1 = jax.block_until_ready(gcn_aggregator_forward(s1, n1, weight))
    assert o1.shape == (16, output_dim)
    assert jnp.allclose(o1, reference(s1, n1), atol=1e-4, rtol=1e-4)

    # case 1, ragged: B not a multiple of the chosen row tile.
    s2 = jax.random.normal(k_s2, (20, input_dim), dtype=jnp.float32)
    n2 = jax.random.normal(k_n2, (20, 8, input_dim), dtype=jnp.float32)
    o2 = jax.block_until_ready(gcn_aggregator_forward(s2, n2, weight))
    assert o2.shape == (20, output_dim)
    assert jnp.allclose(o2, reference(s2, n2), atol=1e-4, rtol=1e-4)

    # case 2: self (2, 3, F) with same-rank neigh (2, 6, F) -> output (2, 3, D).
    s3 = jax.random.normal(k_s3, (2, 3, input_dim), dtype=jnp.float32)
    n3 = jax.random.normal(k_n3, (2, 6, input_dim), dtype=jnp.float32)
    o3 = jax.block_until_ready(gcn_aggregator_forward(s3, n3, weight))
    assert o3.shape == (2, 3, output_dim)
    assert jnp.allclose(o3, reference(s3, n3), atol=1e-4, rtol=1e-4)

    print("KERNEL_OK")
</pallas_src>

<mosaic_0001>
module attributes {stable_mosaic.version = 11 : i64} {
  func.func @_gcn_agg_kernel(%arg0: i32, %arg1: memref<8x32xf32, #tpu.memory_space<vmem>>, %arg2: memref<8x8x32xf32, #tpu.memory_space<vmem>>, %arg3: memref<32x128xf32, #tpu.memory_space<vmem>>, %arg4: memref<8x128xf32, #tpu.memory_space<vmem>>) attributes {dimension_semantics = [#tpu.dimension_semantics<parallel>], iteration_bounds = array<i64: 2>, scalar_prefetch = 0 : i64, scratch_operands = 0 : i64, tpu.core_type = #tpu.core_type<tc>, window_params = [{transform_indices = @transform_0, window_bounds = array<i64: 8, 32>}, {transform_indices = @transform_1, window_bounds = array<i64: 8, 8, 32>}, {pipeline_mode = #tpu.pipeline_mode<synchronous>, transform_indices = @transform_2, window_bounds = array<i64: 32, 128>}, {transform_indices = @transform_3, window_bounds = array<i64: 8, 128>}]} {
    %c0 = arith.constant 0 : index
    %c0_0 = arith.constant 0 : index
    %0 = vector.load %arg1[%c0, %c0_0] : memref<8x32xf32, #tpu.memory_space<vmem>>, vector<8x32xf32>
    %c0_1 = arith.constant 0 : index
    %c0_2 = arith.constant 0 : index
    %c0_3 = arith.constant 0 : index
    %1 = vector.load %arg2[%c0_1, %c0_2, %c0_3] : memref<8x8x32xf32, #tpu.memory_space<vmem>>, vector<8x1x32xf32>
    %2 = vector.shape_cast %1 : vector<8x1x32xf32> to vector<8x32xf32>
    %3 = arith.addf %0, %2 : vector<8x32xf32>
    %c0_4 = arith.constant 0 : index
    %c1 = arith.constant 1 : index
    %c0_5 = arith.constant 0 : index
    %4 = vector.load %arg2[%c0_4, %c1, %c0_5] : memref<8x8x32xf32, #tpu.memory_space<vmem>>, vector<8x1x32xf32>
    %5 = vector.shape_cast %4 : vector<8x1x32xf32> to vector<8x32xf32>
    %6 = arith.addf %3, %5 : vector<8x32xf32>
    %c0_6 = arith.constant 0 : index
    %c2 = arith.constant 2 : index
    %c0_7 = arith.constant 0 : index
    %7 = vector.load %arg2[%c0_6, %c2, %c0_7] : memref<8x8x32xf32, #tpu.memory_space<vmem>>, vector<8x1x32xf32>
    %8 = vector.shape_cast %7 : vector<8x1x32xf32> to vector<8x32xf32>
    %9 = arith.addf %6, %8 : vector<8x32xf32>
    %c0_8 = arith.constant 0 : index
    %c3 = arith.constant 3 : index
    %c0_9 = arith.constant 0 : index
    %10 = vector.load %arg2[%c0_8, %c3, %c0_9] : memref<8x8x32xf32, #tpu.memory_space<vmem>>, vector<8x1x32xf32>
    %11 = vector.shape_cast %10 : vector<8x1x32xf32> to vector<8x32xf32>
    %12 = arith.addf %9, %11 : vector<8x32xf32>
    %c0_10 = arith.constant 0 : index
    %c4 = arith.constant 4 : index
    %c0_11 = arith.constant 0 : index
    %13 = vector.load %arg2[%c0_10, %c4, %c0_11] : memref<8x8x32xf32, #tpu.memory_space<vmem>>, vector<8x1x32xf32>
    %14 = vector.shape_cast %13 : vector<8x1x32xf32> to vector<8x32xf32>
    %15 = arith.addf %12, %14 : vector<8x32xf32>
    %c0_12 = arith.constant 0 : index
    %c5 = arith.constant 5 : index
    %c0_13 = arith.constant 0 : index
    %16 = vector.load %arg2[%c0_12, %c5, %c0_13] : memref<8x8x32xf32, #tpu.memory_space<vmem>>, vector<8x1x32xf32>
    %17 = vector.shape_cast %16 : vector<8x1x32xf32> to vector<8x32xf32>
    %18 = arith.addf %15, %17 : vector<8x32xf32>
    %c0_14 = arith.constant 0 : index
    %c6 = arith.constant 6 : index
    %c0_15 = arith.constant 0 : index
    %19 = vector.load %arg2[%c0_14, %c6, %c0_15] : memref<8x8x32xf32, #tpu.memory_space<vmem>>, vector<8x1x32xf32>
    %20 = vector.shape_cast %19 : vector<8x1x32xf32> to vector<8x32xf32>
    %21 = arith.addf %18, %20 : vector<8x32xf32>
    %c0_16 = arith.constant 0 : index
    %c7 = arith.constant 7 : index
    %c0_17 = arith.constant 0 : index
    %22 = vector.load %arg2[%c0_16, %c7, %c0_17] : memref<8x8x32xf32, #tpu.memory_space<vmem>>, vector<8x1x32xf32>
    %23 = vector.shape_cast %22 : vector<8x1x32xf32> to vector<8x32xf32>
    %24 = arith.addf %21, %23 : vector<8x32xf32>
    %cst = arith.constant 0.111111112 : f32
    %25 = vector.broadcast %cst : f32 to vector<8x32xf32>
    %26 = arith.mulf %24, %25 : vector<8x32xf32>
    %c0_18 = arith.constant 0 : index
    %c0_19 = arith.constant 0 : index
    %27 = vector.load %arg3[%c0_18, %c0_19] : memref<32x128xf32, #tpu.memory_space<vmem>>, vector<32x128xf32>
    %cst_20 = arith.constant dense<0.000000e+00> : vector<8x128xf32>
    %28 = tpu.matmul %26, %27, %cst_20 {dimension_numbers = #tpu.dot_dimension_numbers<[1], [0], [0], [1], [0, 0, 1, 1], [], []>} : vector<8x32xf32>, vector<32x128xf32>, vector<8x128xf32> -> vector<8x128xf32>
    %c0_21 = arith.constant 0 : index
    %c0_22 = arith.constant 0 : index
    %29 = vector.load %arg4[%c0_21, %c0_22] : memref<8x128xf32, #tpu.memory_space<vmem>>, vector<8x128xf32>
    tpu.vector_store %arg4[%c0_21, %c0_22], %28 {strides = array<i32>} : memref<8x128xf32, #tpu.memory_space<vmem>>, vector<8x128xf32>,
    return
  }
  func.func @transform_0(%arg0: i32) -> (i32, i32) {
    %c0_i32 = arith.constant 0 : i32
    %c0_i32_0 = arith.constant 0 : i32
    return %arg0, %c0_i32 : i32, i32
  }
  func.func @transform_1(%arg0: i32) -> (i32, i32, i32) {
    %c0_i32 = arith.constant 0 : i32
    %c0_i32_0 = arith.constant 0 : i32
    %c0_i32_1 = arith.constant 0 : i32
    return %arg0, %c0_i32, %c0_i32_0 : i32, i32, i32
  }
  func.func @transform_2(%arg0: i32) -> (i32, i32) {
    %c0_i32 = arith.constant 0 : i32
    %c0_i32_0 = arith.constant 0 : i32
    %c0_i32_1 = arith.constant 0 : i32
    return %c0_i32, %c0_i32_0 : i32, i32
  }
  func.func @transform_3(%arg0: i32) -> (i32, i32) {
    %c0_i32 = arith.constant 0 : i32
    %c0_i32_0 = arith.constant 0 : i32
    return %arg0, %c0_i32 : i32, i32
  }
}

</mosaic_0001>

<bundles_post_ra>
// kernel: _gcn_agg_flat.1
= control target key start
LH: loop header
LB: loop body
LE: loop exit
PB: predicated region body
PF: predicated region fallthrough
CT: control target
= control target key end

     0   :  { %8 = vsyncpa [#allocation3], 0  ;;  %s1382_s0 = inlined_call_operand.hbm [shape: f32[16,32], index: 0, kind: input, shape index: {}]   ;;  %s1383_s1 = inlined_call_operand.hbm [shape: f32[16,8,32], index: 1, kind: input, shape index: {}]   ;;  %s1384_s2 = inlined_call_operand.hbm [shape: f32[32,128], index: 2, kind: input, shape index: {}]   ;;  %s1385_s3 = inlined_call_operand.hbm [shape: f32[16,128], index: 3, kind: output, shape index: {}]  }
   0x1   :  { %10 = vsyncpa [#allocation3 + $0x1], 0 }
   0x2   :  { %11 = vsyncpa [#allocation6], 0 }
   0x3   :  { %13 = vsyncpa [#allocation6 + $0x1], 0 }
   0x4   :  { %14 = vsyncpa [#allocation4], 0 }
   0x5   :  { %16 = vsyncpa [#allocation4 + $0x1], 0  ;;  %s1003_s12 = smov 0   ;;  %s1005_s13 = smov 0  }
   0x6   :  { %s1007_s14 = smov 0   ;;  %s1009_s15 = smov 0  }
   0x7 LB: > { %s1024_s16 = sadd.s32 4294967295, %s972_s15   ;;  %s701_s17 = sadd.s32 4294967294, %s972_s15   ;;  %s972_s15 = sphi %s1009_s15, %s1407_s15   ;;  %s968_s14 = sphi %s1007_s14, %s1406_s14   ;;  %s964_s13 = sphi %s1005_s13, %s1405_s13   ;;  %s960_s12 = sphi %s1003_s12, %s1404_s12  }
   0x8   : > { %p42_p0 = scmp.ne.s32.totalorder %s964_s13, %s960_s12  ;;  %p1386_p1 = scmp.eq.s32.totalorder %s1024_s16, 0 }
   0x9   : > { %p119_p3 = scmp.eq.s32.totalorder %s701_s17, 1  ;;  %p702_p5 = scmp.ge.s32.totalorder %s972_s15, 1 }
   0xa   : > { %p1033_p4 = por %p1386_p1, %p42_p0  ;;  %p126_p7 = scmp.lt.s32.totalorder %s972_s15, 3 }
   0xb   : > { %p1038_p6 = por %p119_p3, %p42_p0  ;;  %s974_s21 = smov [#allocation7]  }
   0xc   : > { %s1390_s18 = scalar_select %p1033_p4, 1, 0 }
   0xd   : > { %s1391_s19 = scalar_select %p1038_p6, 1, 0 }
   0xe   : > { %p1043_p8 = pnand %p702_p5, %p126_p7  ;;  %s138_s22 = sshll.u32 %s974_s21, 4  ;;  %s1047_s22 = int_to_ptr.vmem [resolvable:$true] %s138_s22 }
   0xf   : > { %s1059_s24 = sadd.s32 1, %s972_s15   ;;  %s29_s25 = sadd.s32 1, %s968_s14 }
  0x10   : > { %s1392_s20 = scalar_select %p1043_p8, 1, 0 }
  0x11   : > { %p753_p9 = pneg %p1043_p8  ;;  %s26_s26 = ssub.s32 %s972_s15, %s1059_s24 }
  0x12   : > { %s810_s29 = scalar_lea.hbm %s1384_s2, 512 }
  0x13   : > { %p1054_p11 = pnand %p753_p9, %p1386_p1  ;;  %p811_p12 = scmp.ne.s32.totalorder %s1384_s2, %s810_s29 }
  0x14   : > { %p817_p5 = scmp.lt.u32.totalorder %s810_s29, %s1384_s2 }
  0x15   : > { %p812_p13 = pneg %p1054_p11 }
  0x17   : > { %p813_p0 = pnand %p812_p13, %p811_p12 }
  0x19   : > { %p814_p3 = pneg %p813_p0 }
  0x1b   : > { %p819_p7 = pnand %p817_p5, %p814_p3 }
  0x1d   : > { %822 = shalt.err (!%p819_p7)
}
  0x1e   : > { %s823_s7 = scalar_lea.vmem %s1047_s22, 512  ;;  %p831_p2 = scmp.lt.s32.totalorder %s1047_s22, %s1047_s22 }
  0x1f   : > { %p824_p9 = scmp.ne.s32.totalorder %s1047_s22, %s823_s7  ;;  %p832_p6 = scmp.lt.s32.totalorder %s823_s7, %s823_s7 }
  0x21   : > { %p826_p10 = pnand %p824_p9, %p812_p13  ;;  %p833_p4 = por %p832_p6, %p831_p2 }
  0x23   : > { %p827_p1 = pneg %p826_p10 }
  0x25   : > { %p834_p8 = pnand %p833_p4, %p827_p1 }
  0x27   : > { %837 = shalt.err (!%p834_p8)
}
  0x28   : > { %s1389_s8 = smov 128   ;;  %s976_s9 = smov 8  }
  0x29   : > { %756 = dma.hbm_to_vmem [thread:$0]  (!%p1054_p11), %s1384_s2, 512, %s1047_s22, [#allocation6], %s1389_s8, %s1389_s8, %s976_s9  }
  0x2a   : > { %p27_p1 = scmp.eq.s32.totalorder %s26_s26, 0  ;;  %p36_p2 = scmp.ne.s32.totalorder %s968_s14, %s964_s13 }
  0x2b   : > { %p37_p4 = scmp.eq.s32.totalorder %s972_s15, 0  ;;  %p769_p6 = scmp.lt.s32.totalorder %s972_s15, 2 }
  0x2c   : > { %s1093_s17 = scalar_select %p27_p1, %s968_s14, %s29_s25  }
  0x2d   : > { %p38_p8 = por %p37_p4, %p36_p2  ;;  %p1394_p10 = scmp.eq.s32.totalorder %s1024_s16, 1 }
  0x2e   : > { %s1102_s23 = sand.u32 1, %s968_s14   ;;  %s706_s27 = sshll.u32 %s972_s15, 7 }
  0x2f   : > { %p1097_p12 = por %p1394_p10, %p36_p2  ;;  %s705_s28 = sshll.u32 %s1102_s23, 3 }
  0x30   : > { %s1109_s29 = scalar_lea.hbm %s1382_s0, %s706_s27  ;;  %s156_s25 = scalar_lea.vmem [#allocation2], %s705_s28 }
  0x31   : > { %s163_s30 = sshll.u32 %s156_s25, 4  ;;  %p1111_p11 = pnand %p769_p6, %p38_p8  ;;  %s1115_s30 = int_to_ptr.vmem [resolvable:$true] %s163_s30 }
  0x32   : > { %s707_s5 = sshll.u32 %s1102_s23, 6  ;;  %s153_s6 = scalar_lea.sflag [#allocation3], %s1102_s23 }
  0x33   : > { %s838_s7 = scalar_lea.hbm %s1109_s29, 128  ;;  %p840_p0 = pneg %p1111_p11 }
  0x34   : > { %p839_p13 = scmp.ne.s32.totalorder %s1109_s29, %s838_s7  ;;  %s843_s27 = scalar_lea.hbm %s1382_s0, 256 }
  0x35   : > { %p844_p7 = scmp.lt.u32.totalorder %s1109_s29, %s1382_s0  ;;  %p845_p9 = scmp.lt.u32.totalorder %s843_s27, %s838_s7 }
  0x36   : > { %p841_p3 = pnand %p840_p0, %p839_p13  ;;  %p847_p2 = scmp.lt.u32.totalorder %s838_s7, %s1109_s29 }
  0x37   : > { %p846_p1 = por %p845_p9, %p844_p7 }
  0x38   : > { %p842_p5 = pneg %p841_p3 }
  0x39   : > { %p848_p4 = por %p847_p2, %p846_p1 }
  0x3b   : > { %p849_p6 = pnand %p848_p4, %p842_p5 }
  0x3d   : > { %852 = shalt.err (!%p849_p6)
}
  0x3e   : > { %s853_s26 = scalar_lea.vmem %s1115_s30, 128  ;;  %s977_s25 = smov [#allocation2]  }
  0x3f   : > { %p854_p8 = scmp.ne.s32.totalorder %s1115_s30, %s853_s26  ;;  %s858_s10 = sshll.u32 %s977_s25, 4  ;;  %s859_s10 = int_to_ptr.vmem [resolvable:$false] %s858_s10 }
  0x40   : > { %s860_s11 = scalar_lea.vmem %s859_s10, 256  ;;  %p861_p3 = scmp.lt.s32.totalorder %s1115_s30, %s859_s10 }
  0x41   : > { %p856_p10 = pnand %p854_p8, %p840_p0  ;;  %p862_p7 = scmp.lt.s32.totalorder %s860_s11, %s853_s26 }
  0x43   : > { %p857_p13 = pneg %p856_p10  ;;  %p863_p9 = por %p862_p7, %p861_p3 }
  0x45   : > { %p864_p1 = pnand %p863_p9, %p857_p13 }
  0x47   : > { %867 = shalt.err (!%p864_p1)
}
  0x48   : > { %760 = dma.hbm_to_vmem [thread:$0]  (!%p1111_p11), %s1109_s29, 128, %s1115_s30, %s153_s6  }
  0x49   : > { %s174_s7 = scalar_lea.vmem [#allocation5], %s707_s5  ;;  %s170_s28 = sand.u32 1, %s972_s15  }
  0x4a   : > { %s181_s27 = sshll.u32 %s174_s7, 4  ;;  %s720_s22 = sshll.u32 %s972_s15, 10  ;;  %s1147_s27 = int_to_ptr.vmem [resolvable:$true] %s181_s27 }
  0x4b   : > { %s1153_s10 = scalar_lea.hbm %s1383_s1, %s720_s22  ;;  %s1155_s11 = scalar_lea.sflag [#allocation6], %s170_s28 }
  0x4c   : > { %s868_s8 = scalar_lea.hbm %s1153_s10, 1024  ;;  %s873_s30 = scalar_lea.hbm %s1383_s1, 2048 }
  0x4d   : > { %p869_p5 = scmp.ne.s32.totalorder %s1153_s10, %s868_s8  ;;  %p874_p6 = scmp.lt.u32.totalorder %s1153_s10, %s1383_s1 }
  0x4e   : > { %p875_p8 = scmp.lt.u32.totalorder %s873_s30, %s868_s8  ;;  %p877_p13 = scmp.lt.u32.totalorder %s868_s8, %s1153_s10 }
  0x4f   : > { %p871_p2 = pnand %p869_p5, %p840_p0 }
  0x50   : > { %p876_p10 = por %p875_p8, %p874_p6 }
  0x51   : > { %p872_p4 = pneg %p871_p2 }
  0x52   : > { %p878_p3 = por %p877_p13, %p876_p10 }
  0x54   : > { %p879_p7 = pnand %p878_p3, %p872_p4 }
  0x56   : > { %882 = shalt.err (!%p879_p7)
}
  0x57   : > { %s883_s7 = scalar_lea.vmem %s1147_s27, 1024  ;;  %s978_s28 = smov [#allocation5]  }
  0x58   : > { %p884_p9 = scmp.ne.s32.totalorder %s1147_s27, %s883_s7  ;;  %s888_s22 = sshll.u32 %s978_s28, 4  ;;  %s889_s22 = int_to_ptr.vmem [resolvable:$false] %s888_s22 }
  0x59   : > { %s890_s26 = scalar_lea.vmem %s889_s22, 2048  ;;  %p891_p2 = scmp.lt.s32.totalorder %s1147_s27, %s889_s22 }
  0x5a   : > { %p886_p1 = pnand %p884_p9, %p840_p0  ;;  %p892_p6 = scmp.lt.s32.totalorder %s890_s26, %s883_s7 }
  0x5c   : > { %p887_p5 = pneg %p886_p1  ;;  %p893_p8 = por %p892_p6, %p891_p2 }
  0x5e   : > { %p894_p10 = pnand %p893_p8, %p887_p5 }
  0x60   : > { %897 = shalt.err (!%p894_p10)
}
  0x61   : > { %s1397_s8 = smov 128   ;;  %p1398_p0 = scmp.ne.s32.totalorder %s1392_s20, 0 }
  0x62   : > { %763 = dma.hbm_to_vmem [thread:$0]  (!%p1111_p11), %s1153_s10, 1024, %s1147_s27, %s1155_s11, %s1397_s8, %s1397_s8, %s976_s9  }
  0x63   : > { %193 = sbr.rel (%p1398_p0) target bundleno = 384 (0x180), region = 32  ;;  %s1187_s25 = sand.u32 (!%p1398_p0), 1, %s964_s13  }
  0x64   : > { %s711_s23 = sshll.u32 (!%p1398_p0), %s1187_s25, 3  ;;  %s196_s29 = scalar_lea.sflag (!%p1398_p0), [#allocation3], %s1187_s25 }
  0x65   : > { %s1193_s4 = scalar_lea.vmem (!%p1398_p0), [#allocation2], %s711_s23  ;;  %p1399_p4 = scmp.ne.s32.totalorder (!%p1398_p0), %s1390_s18, 0 }
  0x6a   : > { %943 = dma.done.wait (%p1399_p4), %s196_s29, 128  }
  0x6b   : > { %945 = vsyncadd (%p1399_p4), %s196_s29, 4294967168  ;;  %s204_s20 = sand.u32 1, %s1024_s16   ;;  %s712_s9 = sshll.u32 %s1187_s25, 6 }
  0x6c   : > { %s205_s27 = scalar_lea.sflag [#allocation6], %s204_s20  ;;  %s1201_s10 = scalar_lea.vmem [#allocation5], %s712_s9 }
  0x6d   : > { %947 = dma.done.wait (%p1399_p4), %s205_s27, 1024  }
  0x6e   : > { %949 = vsyncadd (%p1399_p4), %s205_s27, 4294966272  ;;  %p1400_p11 = scmp.eq.s32.totalorder %s1024_s16, 0 }
  0x70   : > { %951 = dma.done.wait (%p1400_p11), [#allocation6], 512   ;;  %p1401_p13 = pmov %p1400_p11 }
  0x71   : > { %v979_v0 = vmov 0.0|0.0   ;;  %vm980_vm0 = vmmov 0   ;;  %v981_v1 = vmov 0.0   ;;  %v506_v2 = vld [vmem:[#allocation7] sm:$0xff]  ;;  %v507_v3 = vld [vmem:[#allocation7 + $0x8] sm:$0xff]  ;;  %v508_v4 = vld [vmem:[#allocation7 + $0x10] sm:$0xff] }
  0x72   : > { %953 = vsyncadd (%p1401_p13), [#allocation6], 4294966784  ;;  %737 = vmatprep.subr.bf16.mxu0 %v979_v0  ;;  %734 = vmatprep.mubr.msk.f32.mxu0 %vm980_vm0, %v981_v1  ;;  %vm259_vm1 = vcmask 1041409   ;;  %vm262_vm2 = vcmask 1042434   ;;  %v738_v5 = vpack.c.bf16 %v507_v3, %v506_v2  ;;  %v509_v6 = vld [vmem:[#allocation7 + $0x18] sm:$0xff]  ;;  %vm265_vm3 = vcmask 1043459  }
  0x73   : > { %v242_v7 = vld [vmem:[%s1201_s10] sm:$0x1]  ;;  %vm268_vm4 = vcmask 1044484   ;;  %vm271_vm5 = vcmask 1045509   ;;  %v243_v8 = vld [vmem:[%s1201_s10 + $0x8] sm:$0x1]  ;;  %v741_v11 = vpack.c.bf16 %v509_v6, %v508_v4 }
  0x74   : > { %v244_v9 = vld [vmem:[%s1201_s10 + $0x10] sm:$0x1]  ;;  %v245_v10 = vld [vmem:[%s1201_s10 + $0x18] sm:$0x1]  ;;  %739 = vmatpush3.bf16.msra.mxu0 %v738_v5  ;;  %v246_v12 = vld [vmem:[%s1201_s10 + $0x20] sm:$0x1] }
  0x75   : > { %v247_v13 = vld [vmem:[%s1201_s10 + $0x28] sm:$0x1]  ;;  %v248_v14 = vld [vmem:[%s1201_s10 + $0x30] sm:$0x1]  ;;  %740 = vmatprep.subr.bf16.mxu0 %v979_v0  ;;  %v249_v15 = vld [vmem:[%s1201_s10 + $0x38] sm:$0x1] }
  0x76   : > { %v258_v16 = vrot.slane %v243_v8, 7  ;;  %v261_v17 = vrot.slane %v244_v9, 6  ;;  %v264_v18 = vrot.slane %v245_v10, 5  ;;  %vm274_vm6 = vcmask 1046534   ;;  %v281_v23 = vld [vmem:[%s1201_s10 + $0x1] sm:$0x1] }
  0x77   : > { %v267_v19 = vrot.slane %v246_v12, 4  ;;  %v270_v20 = vrot.slane %v247_v13, 3  ;;  %v273_v21 = vrot.slane %v248_v14, 2  ;;  %v276_v22 = vrot.slane %v249_v15, 1  ;;  %v282_v25 = vld [vmem:[%s1201_s10 + $0x9] sm:$0x1] }
  0x78   : > { %v260_v24 = vsel %vm259_vm1, %v258_v16, %v242_v7  ;;  %v283_v26 = vld [vmem:[%s1201_s10 + $0x11] sm:$0x1]  ;;  %v284_v27 = vld [vmem:[%s1201_s10 + $0x19] sm:$0x1]  ;;  %742 = vmatpush3.bf16.msra.mxu0 %v741_v11  ;;  %v285_v29 = vld [vmem:[%s1201_s10 + $0x21] sm:$0x1] }
  0x79   : > { %v263_v28 = vsel %vm262_vm2, %v261_v17, %v260_v24  ;;  %v286_v30 = vld [vmem:[%s1201_s10 + $0x29] sm:$0x1]  ;;  %v287_v31 = vld [vmem:[%s1201_s10 + $0x31] sm:$0x1]  ;;  %v288_v33 = vld [vmem:[%s1201_s10 + $0x39] sm:$0x1] }
  0x7a   : > { %v266_v32 = vsel %vm265_vm3, %v264_v18, %v263_v28  ;;  %v297_v34 = vrot.slane %v282_v25, 7  ;;  %v299_v35 = vrot.slane %v283_v26, 6  ;;  %v301_v36 = vrot.slane %v284_v27, 5  ;;  %v241_v37 = vld [vmem:[%s1193_s4] sm:$0xff]  ;;  %v313_v41 = vld [vmem:[%s1201_s10 + $0x2] sm:$0x1] }
  0x7b   : > { %v269_v38 = vsel %vm268_vm4, %v267_v19, %v266_v32  ;;  %vm277_vm7 = vcmask 1047559   ;;  %v303_v39 = vrot.slane %v285_v29, 4  ;;  %v305_v40 = vrot.slane %v286_v30, 3  ;;  %v314_v46 = vld [vmem:[%s1201_s10 + $0xa] sm:$0x1]  ;;  %s239_s18 = scalar_lea.vmem [#allocation8], %s711_s23 }
  0x7c   : > { %v272_v42 = vsel %vm271_vm5, %v270_v20, %v269_v38  ;;  %v298_v43 = vsel %vm259_vm1, %v297_v34, %v281_v23  ;;  %v307_v44 = vrot.slane %v287_v31, 2  ;;  %v309_v45 = vrot.slane %v288_v33, 1  ;;  %v315_v47 = vld [vmem:[%s1201_s10 + $0x12] sm:$0x1]  ;;  %v316_v50 = vld [vmem:[%s1201_s10 + $0x1a] sm:$0x1] }
  0x7d   : > { %v275_v48 = vsel %vm274_vm6, %v273_v21, %v272_v42  ;;  %v300_v49 = vsel %vm262_vm2, %v299_v35, %v298_v43  ;;  %v317_v51 = vld [vmem:[%s1201_s10 + $0x22] sm:$0x1]  ;;  %v318_v52 = vld [vmem:[%s1201_s10 + $0x2a] sm:$0x1]  ;;  %v319_v55 = vld [vmem:[%s1201_s10 + $0x32] sm:$0x1] }
  0x7e   : > { %v278_v53 = vsel %vm277_vm7, %v276_v22, %v275_v48  ;;  %v302_v54 = vsel %vm265_vm3, %v301_v36, %v300_v49  ;;  %v320_v56 = vld [vmem:[%s1201_s10 + $0x3a] sm:$0x1]  ;;  %v329_v57 = vrot.slane %v314_v46, 7  ;;  %v331_v58 = vrot.slane %v315_v47, 6  ;;  %v345_v63 = vld [vmem:[%s1201_s10 + $0x3] sm:$0x1] }
  0x7f   : > { %v280_v59 = vadd.f32 %v278_v53, %v241_v37  ;;  %v304_v60 = vsel %vm268_vm4, %v303_v39, %v302_v54  ;;  %v333_v61 = vrot.slane %v316_v50, 5  ;;  %v335_v62 = vrot.slane %v317_v51, 4  ;;  %v346_v0 = vld [vmem:[%s1201_s10 + $0xb] sm:$0x1]  ;;  %v347_v5 = vld [vmem:[%s1201_s10 + $0x13] sm:$0x1] }
  0x80   : > { %v306_v1 = vsel %vm271_vm5, %v305_v40, %v304_v60  ;;  %v330_v2 = vsel %vm259_vm1, %v329_v57, %v313_v41  ;;  %v337_v3 = vrot.slane %v318_v52, 3  ;;  %v339_v4 = vrot.slane %v319_v55, 2  ;;  %v348_v6 = vld [vmem:[%s1201_s10 + $0x1b] sm:$0x1]  ;;  %v349_v10 = vld [vmem:[%s1201_s10 + $0x23] sm:$0x1] }
  0x81   : > { %v308_v7 = vsel %vm274_vm6, %v307_v44, %v306_v1  ;;  %v332_v8 = vsel %vm262_vm2, %v331_v58, %v330_v2  ;;  %v341_v9 = vrot.slane %v320_v56, 1  ;;  %v350_v11 = vld [vmem:[%s1201_s10 + $0x2b] sm:$0x1]  ;;  %v361_v12 = vrot.slane %v346_v0, 7  ;;  %v351_v15 = vld [vmem:[%s1201_s10 + $0x33] sm:$0x1] }
  0x82   : > { %v310_v13 = vsel %vm277_vm7, %v309_v45, %v308_v7  ;;  %v334_v14 = vsel %vm265_vm3, %v333_v61, %v332_v8  ;;  %v352_v16 = vld [vmem:[%s1201_s10 + $0x3b] sm:$0x1]  ;;  %v363_v17 = vrot.slane %v347_v5, 6  ;;  %v365_v18 = vrot.slane %v348_v6, 5  ;;  %v377_v23 = vld [vmem:[%s1201_s10 + $0x4] sm:$0x1] }
  0x83   : > { %v312_v19 = vadd.f32 %v310_v13, %v280_v59  ;;  %v336_v20 = vsel %vm268_vm4, %v335_v62, %v334_v14  ;;  %v362_v21 = vsel %vm259_vm1, %v361_v12, %v345_v63  ;;  %v367_v22 = vrot.slane %v349_v10, 4  ;;  %v378_v24 = vld [vmem:[%s1201_s10 + $0xc] sm:$0x1]  ;;  %v379_v29 = vld [vmem:[%s1201_s10 + $0x14] sm:$0x1]  ;;  %s599_s11 = sshll.u32 %s239_s18, 4  ;;  %s1335_s11 = int_to_ptr.vmem [resolvable:$true] %s599_s11 }
  0x84   : > { %v338_v25 = vsel %vm271_vm5, %v337_v3, %v336_v20  ;;  %v364_v26 = vsel %vm262_vm2, %v363_v17, %v362_v21  ;;  %v369_v27 = vrot.slane %v350_v11, 3  ;;  %v371_v28 = vrot.slane %v351_v15, 2  ;;  %v380_v30 = vld [vmem:[%s1201_s10 + $0x1c] sm:$0x1]  ;;  %v381_v34 = vld [vmem:[%s1201_s10 + $0x24] sm:$0x1] }
  0x85   : > { %v340_v31 = vsel %vm274_vm6, %v339_v4, %v338_v25  ;;  %v366_v32 = vsel %vm265_vm3, %v365_v18, %v364_v26  ;;  %v373_v33 = vrot.slane %v352_v16, 1  ;;  %v382_v35 = vld [vmem:[%s1201_s10 + $0x2c] sm:$0x1]  ;;  %v393_v36 = vrot.slane %v378_v24, 7  ;;  %v383_v39 = vld [vmem:[%s1201_s10 + $0x34] sm:$0x1] }
  0x86   : > { %v342_v37 = vsel %vm277_vm7, %v341_v9, %v340_v31  ;;  %v368_v38 = vsel %vm268_vm4, %v367_v22, %v366_v32  ;;  %v384_v40 = vld [vmem:[%s1201_s10 + $0x3c] sm:$0x1]  ;;  %v395_v41 = vrot.slane %v379_v29, 6  ;;  %v397_v42 = vrot.slane %v380_v30, 5  ;;  %v409_v47 = vld [vmem:[%s1201_s10 + $0x5] sm:$0x1] }
  0x87   : > { %v344_v43 = vadd.f32 %v342_v37, %v312_v19  ;;  %v370_v44 = vsel %vm271_vm5, %v369_v27, %v368_v38  ;;  %v394_v45 = vsel %vm259_vm1, %v393_v36, %v377_v23  ;;  %v399_v46 = vrot.slane %v381_v34, 4  ;;  %v410_v48 = vld [vmem:[%s1201_s10 + $0xd] sm:$0x1]  ;;  %v411_v53 = vld [vmem:[%s1201_s10 + $0x15] sm:$0x1]  ;;  %s717_s30 = sshll.u32 %s1024_s16, 7 }
  0x88   : > { %v372_v49 = vsel %vm274_vm6, %v371_v28, %v370_v44  ;;  %v396_v50 = vsel %vm262_vm2, %v395_v41, %v394_v45  ;;  %v401_v51 = vrot.slane %v382_v35, 3  ;;  %v403_v52 = vrot.slane %v383_v39, 2  ;;  %v412_v54 = vld [vmem:[%s1201_s10 + $0x1d] sm:$0x1]  ;;  %v413_v58 = vld [vmem:[%s1201_s10 + $0x25] sm:$0x1]  ;;  %s1340_s7 = scalar_lea.hbm %s1385_s3, %s717_s30 }
  0x89   : > { %v374_v55 = vsel %vm277_vm7, %v373_v33, %v372_v49  ;;  %v398_v56 = vsel %vm265_vm3, %v397_v42, %v396_v50  ;;  %v405_v57 = vrot.slane %v384_v40, 1  ;;  %v414_v59 = vld [vmem:[%s1201_s10 + $0x2d] sm:$0x1]  ;;  %v425_v60 = vrot.slane %v410_v48, 7  ;;  %v415_v63 = vld [vmem:[%s1201_s10 + $0x35] sm:$0x1] }
  0x8a   : > { %v376_v61 = vadd.f32 %v374_v55, %v344_v43  ;;  %v400_v62 = vsel %vm268_vm4, %v399_v46, %v398_v56  ;;  %v416_v0 = vld [vmem:[%s1201_s10 + $0x3d] sm:$0x1]  ;;  %v427_v1 = vrot.slane %v411_v53, 6  ;;  %v429_v2 = vrot.slane %v412_v54, 5  ;;  %v441_v7 = vld [vmem:[%s1201_s10 + $0x6] sm:$0x1] }
  0x8b   : > { %v402_v3 = vsel %vm271_vm5, %v401_v51, %v400_v62  ;;  %v426_v4 = vsel %vm259_vm1, %v425_v60, %v409_v47  ;;  %v431_v5 = vrot.slane %v413_v58, 4  ;;  %v433_v6 = vrot.slane %v414_v59, 3  ;;  %v442_v8 = vld [vmem:[%s1201_s10 + $0xe] sm:$0x1]  ;;  %v443_v12 = vld [vmem:[%s1201_s10 + $0x16] sm:$0x1] }
  0x8c   : > { %v404_v9 = vsel %vm274_vm6, %v403_v52, %v402_v3  ;;  %v428_v10 = vsel %vm262_vm2, %v427_v1, %v426_v4  ;;  %v435_v11 = vrot.slane %v415_v63, 2  ;;  %v444_v13 = vld [vmem:[%s1201_s10 + $0x1e] sm:$0x1]  ;;  %v437_v16 = vrot.slane %v416_v0, 1  ;;  %v445_v17 = vld [vmem:[%s1201_s10 + $0x26] sm:$0x1] }
  0x8d   : > { %v406_v14 = vsel %vm277_vm7, %v405_v57, %v404_v9  ;;  %v430_v15 = vsel %vm265_vm3, %v429_v2, %v428_v10  ;;  %v446_v18 = vld [vmem:[%s1201_s10 + $0x2e] sm:$0x1]  ;;  %v447_v20 = vld [vmem:[%s1201_s10 + $0x36] sm:$0x1]  ;;  %v448_v21 = vld [vmem:[%s1201_s10 + $0x3e] sm:$0x1] }
  0x8e   : > { %v432_v19 = vsel %vm268_vm4, %v431_v5, %v430_v15  ;;  %v457_v22 = vrot.slane %v442_v8, 7  ;;  %v459_v23 = vrot.slane %v443_v12, 6  ;;  %v408_v24 = vadd.f32 %v406_v14, %v376_v61  ;;  %v473_v28 = vld [vmem:[%s1201_s10 + $0x7] sm:$0x1]  ;;  %v474_v29 = vld [vmem:[%s1201_s10 + $0xf] sm:$0x1] }
  0x8f   : > { %v434_v25 = vsel %vm271_vm5, %v433_v6, %v432_v19  ;;  %v461_v26 = vrot.slane %v444_v13, 5  ;;  %v463_v27 = vrot.slane %v445_v17, 4  ;;  %v465_v32 = vrot.slane %v446_v18, 3  ;;  %v475_v33 = vld [vmem:[%s1201_s10 + $0x17] sm:$0x1]  ;;  %s586_s28 = scalar_lea.sflag [#allocation4], %s1187_s25 }
  0x90   : > { %v436_v30 = vsel %vm274_vm6, %v435_v11, %v434_v25  ;;  %v458_v31 = vsel %vm259_vm1, %v457_v22, %v441_v7  ;;  %v476_v34 = vld [vmem:[%s1201_s10 + $0x1f] sm:$0x1]  ;;  %v467_v37 = vrot.slane %v447_v20, 2  ;;  %v477_v38 = vld [vmem:[%s1201_s10 + $0x27] sm:$0x1]  ;;  %v469_v41 = vrot.slane %v448_v21, 1 }
  0x91   : > { %v438_v35 = vsel %vm277_vm7, %v437_v16, %v436_v30  ;;  %v460_v36 = vsel %vm262_vm2, %v459_v23, %v458_v31  ;;  %v478_v39 = vld [vmem:[%s1201_s10 + $0x2f] sm:$0x1]  ;;  %v479_v42 = vld [vmem:[%s1201_s10 + $0x37] sm:$0x1]  ;;  %v489_v43 = vrot.slane %v474_v29, 7  ;;  %v491_v44 = vrot.slane %v475_v33, 6 }
  0x92   : > { %v462_v40 = vsel %vm265_vm3, %v461_v26, %v460_v36  ;;  %v440_v45 = vadd.f32 %v438_v35, %v408_v24  ;;  %v480_v47 = vld [vmem:[%s1201_s10 + $0x3f] sm:$0x1]  ;;  %v493_v48 = vrot.slane %v476_v34, 5  ;;  %v495_v49 = vrot.slane %v477_v38, 4  ;;  %s898_s22 = scalar_lea.vmem %s1335_s11, 128  ;;  %s982_s16 = smov [#allocation8]  }
  0x93   : > { %v464_v46 = vsel %vm268_vm4, %v463_v27, %v462_v40  ;;  %v490_v51 = vsel %vm259_vm1, %v489_v43, %v473_v28  ;;  %v497_v52 = vrot.slane %v478_v39, 3  ;;  %v499_v55 = vrot.slane %v479_v42, 2  ;;  %p899_p3 = scmp.ne.s32.totalorder %s1335_s11, %s898_s22  ;;  %s902_s26 = sshll.u32 %s982_s16, 4  ;;  %s903_s26 = int_to_ptr.vmem [resolvable:$false] %s902_s26 }
  0x94   : > { %v466_v50 = vsel %vm271_vm5, %v465_v32, %v464_v46  ;;  %v492_v54 = vsel %vm262_vm2, %v491_v44, %v490_v51  ;;  %v501_v58 = vrot.slane %v480_v47, 1  ;;  %vm510_vm8 = vcmask 261120   ;;  %s904_s8 = scalar_lea.vmem %s903_s26, 256  ;;  %p905_p1 = scmp.lt.s32.totalorder %s1335_s11, %s903_s26 }
  0x95   : > { %v468_v53 = vsel %vm274_vm6, %v467_v37, %v466_v50  ;;  %v494_v57 = vsel %vm265_vm3, %v493_v48, %v492_v54  ;;  %p900_p7 = pnand %p899_p3, %p1097_p12  ;;  %p906_p5 = scmp.lt.s32.totalorder %s904_s8, %s898_s22 }
  0x96   : > { %v470_v56 = vsel %vm277_vm7, %v469_v41, %v468_v53  ;;  %v496_v60 = vsel %vm268_vm4, %v495_v49, %v494_v57 }
  0x97   : > { %v472_v59 = vadd.f32 %v470_v56, %v440_v45  ;;  %v498_v61 = vsel %vm271_vm5, %v497_v52, %v496_v60  ;;  %p901_p9 = pneg %p900_p7  ;;  %p907_p2 = por %p906_p5, %p905_p1 }
  0x98   : > { %v500_v62 = vsel %vm274_vm6, %v499_v55, %v498_v61 }
  0x99   : > { %v502_v63 = vsel %vm277_vm7, %v501_v58, %v500_v62  ;;  %p908_p6 = pnand %p907_p2, %p901_p9 }
  0x9a   : > { %v504_v0 = vadd.f32 %v502_v63, %v472_v59 }
  0x9c   : > { %v505_v1 = vmul.f32 0.11111111, %v504_v0 }
  0x9e   : > { %735 = vmatmul.mubr.msk.f32.vlgmr.msra.gmra.mrb[0].mxu0 %vm510_vm8, %v505_v1 }
 0x171   : > { %v580_v2 = vpop.f32.mrb[0].mxu0 }
 0x172   : > { %584 = vst [vmem:[%s239_s18] sm:$0xff] %v580_v2  ;;  %v736_v3 = vpop.f32.mrb[1].mxu0 }
 0x173   : > { %911 = shalt.err (!%p908_p6)
}
 0x174   : > { %s912_s25 = scalar_lea.hbm %s1340_s7, 128  ;;  %s916_s4 = scalar_lea.hbm %s1385_s3, 256 }
 0x175   : > { %p913_p8 = scmp.ne.s32.totalorder %s1340_s7, %s912_s25  ;;  %p917_p4 = scmp.lt.u32.totalorder %s1340_s7, %s1385_s3 }
 0x176   : > { %p918_p11 = scmp.lt.u32.totalorder %s916_s4, %s912_s25  ;;  %p920_p3 = scmp.lt.u32.totalorder %s912_s25, %s1340_s7 }
 0x177   : > { %p914_p10 = pnand %p913_p8, %p1097_p12 }
 0x178   : > { %p919_p13 = por %p918_p11, %p917_p4 }
 0x179   : > { %p915_p0 = pneg %p914_p10 }
 0x17a   : > { %p921_p7 = por %p920_p3, %p919_p13 }
 0x17c   : > { %p922_p9 = pnand %p921_p7, %p915_p0 }
 0x17e   : > { %925 = shalt.err (!%p922_p9)
}
 0x17f   : > { %751 = dma.vmem_to_hbm [thread:$0]  (%p1097_p12), %s1335_s11, 128, %s1340_s7, %s586_s28  }
 0x180 PF: > { %s611_s27 = sand.u32 1, %s960_s12   ;;  %p1402_p1 = scmp.ne.s32.totalorder %s1391_s19, 0 }
 0x181   : > { %p1403_p5 = scmp.ge.s32.totalorder %s972_s15, 2  ;;  %s612_s10 = scalar_lea.sflag [#allocation4], %s611_s27 }
 0x183   : > { %p765_p2 = pnand %p1403_p5, %p1402_p1 }
 0x185   : > { %955 = dma.done.wait (!%p765_p2), %s612_s10, 128  }
 0x186   : > { %957 = vsyncadd (!%p765_p2), %s612_s10, 4294967168  ;;  %p19_p6 = scmp.ge.s32.totalorder %s1059_s24, 4   ;;  %s1404_s12 = smov %s964_s13 }
 0x187   : > { %s1405_s13 = smov %s968_s14  ;;  %s1406_s14 = smov %s1093_s17 }
 0x188   : > { %s1407_s15 = smov %s1059_s24  ;;  %21 = sbr.rel (!%p19_p6) target bundleno = 7 (0x7), region = 94 }
 0x18f   :  { %617 = vsyncpa [#allocation3], 1 }
 0x190   :  { %619 = vsyncpa [#allocation3 + $0x1], 1 }
 0x191   :  { %620 = vsyncpa [#allocation6], 1 }
 0x192   :  { %622 = vsyncpa [#allocation6 + $0x1], 1 }
 0x193   :  { %623 = vsyncpa [#allocation4], 1 }
 0x194   :  { %625 = vsyncpa [#allocation4 + $0x1], 1 }

</bundles_post_ra>
